<compile_context>
chip_gen: v6e
topology: v6e:2x2x1
jax: 0.10.0
libtpu: 0.0.40
codegen_flags: <defaults>
</compile_context>

<pallas_src>
import functools
import math

import jax
import jax.numpy as jnp
from jax.experimental import pallas as pl
from jax.experimental.pallas import tpu as pltpu


def _round_up(v, m):
    return ((v + m - 1) // m) * m


def _vmem_capacity_bytes():
    """Per-core VMEM capacity; conservative 64 MiB fallback (v7x per-TC)."""
    try:
        info = pltpu.get_tpu_info()
        cap = getattr(info, "vmem_capacity_bytes", None)
        if cap:
            return int(cap)
    except Exception:
        pass
    return 64 * 1024 * 1024


def _som_dist_kernel(x_ref, w_ref, x2_ref, w2_ref, o_ref, *, x_resident):
    """Accumulate x.W over K tiles directly in the f32 output block; finalize folds in
    the precomputed norms and the -2 factor and clamps at 0."""
    k = pl.program_id(2)

    @pl.when(k == 0)
    def _init():
        o_ref[...] = jnp.zeros_like(o_ref)

    if x_resident:
        x = x_ref[k]          # (tm, tk) slice of the i-resident (Kb, tm, tk) panel
    else:
        x = x_ref[...]        # (tm, tk) streamed tile

    # Raw cross term on the MXU; norms and -2 are applied once at finalize.
    o_ref[...] += jnp.dot(x, w_ref[...], preferred_element_type=jnp.float32)

    @pl.when(k == pl.num_programs(2) - 1)
    def _finalize():
        res = x2_ref[...] + w2_ref[...] - 2.0 * o_ref[...]
        # Expansion can dip slightly negative under cancellation; distances are >= 0.
        o_ref[...] = jnp.maximum(res, 0.0)


def _pick_panel_tile(full_padded, target=1024):
    """Largest multiple-of-128 tile <= target that divides the padded extent."""
    if full_padded <= target:
        return full_padded
    units = full_padded // 128
    best = 1
    for u in range(1, target // 128 + 1):
        if units % u == 0:
            best = u
    return best * 128


def topological_map_forward(x, weights, *, tm=None, tn=None, tk=None, x_resident=None):
    """Squared Euclidean distances between x rows and weight columns.

    x:       (B, D)
    weights: (D, O)
    returns  (B, O) float32
    """
    B, D = x.shape
    D2, O = weights.shape
    assert D == D2, "input_size mismatch between x and weights"

    isx = jnp.dtype(x.dtype).itemsize
    isw = jnp.dtype(weights.dtype).itemsize

    vmem_ceiling = int(0.75 * _vmem_capacity_bytes())

    tn_auto = tn is None

    # --- batch tile: minimize padded rows (padded rows are pure wasted DMA/MXU) ---
    if tm is None:
        if B <= 256:
            tm = _round_up(B, 8)
        else:
            tm = 256 if (_round_up(B, 256) - B) <= (_round_up(B, 128) - B) else 128
    tm = max(8, _round_up(tm, 8))
    Bp = _round_up(B, tm)

    # --- output tile: big, lane-dense (this regime is HBM weight streaming) ---
    Op128 = _round_up(O, 128)
    if tn is None:
        tn = _pick_panel_tile(Op128, 1024)
        Op = Op128
    else:
        tn = min(_round_up(tn, 128), Op128)
        Op = _round_up(O, tn)

    # --- reduction tile ---
    Dp128 = _round_up(D, 128)
    if tk is None:
        tk = _pick_panel_tile(Dp128, 1024)
        Dp = Dp128
    else:
        tk = min(_round_up(tk, 128), Dp128)
        Dp = _round_up(D, tk)

    # v7x megacore: if all parallel axes collapse to a single block, split tn so both
    # TensorCores get work (harmless on single-core parts).
    if tn_auto and (Bp // tm) == 1 and (Op // tn) == 1 and tn % 256 == 0:
        tn //= 2
        Op = _round_up(O, tn)

    Kb = Dp // tk

    # --- x residency: keep the whole x row-panel in VMEM across j,k when it fits ---
    base_bytes = (2 * tm * tk * isx            # streamed x tile (worst case)
                  + 2 * tk * tn * isw          # weight tile (double-buffered)
                  + 2 * tm * tn * 4            # f32 output/accumulator block
                  + 2 * (tm * 128 + 8 * tn) * 4)   # norm vectors (layout-padded)
    if x_resident is None:
        panel_bytes = 2 * tm * Dp * isx
        x_resident = (Kb > 1) and (panel_bytes + base_bytes <= vmem_ceiling)

    # --- zero-pad (zero rows/cols contribute nothing to dot or norms) ---
    xp = x if (Bp == B and Dp == D) else jnp.pad(x, ((0, Bp - B), (0, Dp - D)))
    wp = weights if (Dp == D and Op == O) else jnp.pad(weights, ((0, Dp - D), (0, Op - O)))

    # Norms hoisted out of the kernel (tiny XLA reduces, done once).
    x_norm2 = jnp.sum(xp.astype(jnp.float32) ** 2, axis=1, keepdims=True)   # (Bp, 1)
    w_norm2 = jnp.sum(wp.astype(jnp.float32) ** 2, axis=0, keepdims=True)   # (1, Op)

    if x_resident:
        # (Kb, Bp, tk): k-th chunk selected with a leading-axis dynamic index in-kernel.
        x_in = xp.reshape(Bp, Kb, tk).transpose(1, 0, 2)
        x_spec = pl.BlockSpec((Kb, tm, tk), lambda i, j, k: (0, i, 0))
    else:
        x_in = xp
        x_spec = pl.BlockSpec((tm, tk), lambda i, j, k: (i, k))

    grid = (Bp // tm, Op // tn, Dp // tk)

    x_tile_bytes = 2 * tm * (Dp if x_resident else tk) * isx
    tile_bytes = (x_tile_bytes + 2 * tk * tn * isw + 2 * tm * tn * 4
                  + 2 * (tm * 128 + 8 * tn) * 4)
    vmem_limit = int(min(max(int(1.25 * tile_bytes), 32 * 1024 * 1024), vmem_ceiling))

    x_reads = 1 if x_resident else (Op // tn)
    cost = pl.CostEstimate(
        flops=2 * Bp * Op * Dp,
        transcendentals=0,
        bytes_accessed=int(x_reads * Bp * Dp * isx
                           + (Bp // tm) * Dp * Op * isw
                           + Bp * Op * 4 + Bp * 4 + Op * 4),
    )

    kernel = functools.partial(_som_dist_kernel, x_resident=x_resident)

    out = pl.pallas_call(
        kernel,
        out_shape=jax.ShapeDtypeStruct((Bp, Op), jnp.float32),
        grid_spec=pltpu.PrefetchScalarGridSpec(
            num_scalar_prefetch=0,
            grid=grid,
            in_specs=[
                x_spec,                                            # x panel / tile
                pl.BlockSpec((tk, tn), lambda i, j, k: (k, j)),    # weight tile
                pl.BlockSpec((tm, 1), lambda i, j, k: (i, 0)),     # ||x||^2
                pl.BlockSpec((1, tn), lambda i, j, k: (0, j)),     # ||w||^2
            ],
            out_specs=pl.BlockSpec((tm, tn), lambda i, j, k: (i, j)),
        ),
        compiler_params=pltpu.CompilerParams(
            dimension_semantics=("parallel", "parallel", "arbitrary"),
            vmem_limit_bytes=vmem_limit,
        ),
        cost_estimate=cost,
    )(x_in, wp, x_norm2, w_norm2)

    return out[:B, :O]


def init_weights(key, input_size, output_size):
    """Deterministic stand-in for torch.nn.init.xavier_normal_ scaled by 1e-4."""
    std = math.sqrt(2.0 / (input_size + output_size))
    w = std * jax.random.normal(key, (input_size, output_size), dtype=jnp.float32)
    return 1e-4 * w


def _reference(x, weights):
    diffs = weights[None, :, :] - x[:, :, None]          # (B, D, O)
    return jnp.sum(diffs * diffs, axis=1)                # (B, O)


if __name__ == "__main__":
    # Shapes consistent with the module: output_dims=2 => output_size is a square.
    batch = 2
    input_size = 32
    output_size = 64          # side = 8

    key = jax.random.PRNGKey(0)
    kx, kw = jax.random.split(key)
    x = jax.random.normal(kx, (batch, input_size), dtype=jnp.float32)
    weights = init_weights(kw, input_size, output_size)

    out = jax.block_until_ready(topological_map_forward(x, weights))
    ref = _reference(x, weights)
    assert out.shape == (batch, output_size)
    assert jnp.allclose(out, ref, atol=1e-4, rtol=1e-4), float(jnp.max(jnp.abs(out - ref)))

    # Multi-tile K accumulation, multi-j grid, i-resident x panel path.
    b2, d2, o2 = 4, 256, 256
    k2x, k2w = jax.random.split(jax.random.PRNGKey(1))
    x_big = jax.random.normal(k2x, (b2, d2), dtype=jnp.float32)
    w_big = init_weights(k2w, d2, o2)
    out2 = jax.block_until_ready(
        topological_map_forward(x_big, w_big, tm=8, tn=128, tk=128))
    ref2 = _reference(x_big, w_big)
    assert out2.shape == (b2, o2)
    assert jnp.allclose(out2, ref2, atol=1e-3, rtol=1e-4), float(jnp.max(jnp.abs(out2 - ref2)))

    # Unaligned dims + forced streaming (non-resident) x path.
    b3, d3, o3 = 3, 100, 49   # side = 7
    k3x, k3w = jax.random.split(jax.random.PRNGKey(2))
    x_odd = jax.random.normal(k3x, (b3, d3), dtype=jnp.float32)
    w_odd = init_weights(k3w, d3, o3)
    out3 = jax.block_until_ready(
        topological_map_forward(x_odd, w_odd, x_resident=False))
    ref3 = _reference(x_odd, w_odd)
    assert out3.shape == (b3, o3)
    assert jnp.allclose(out3, ref3, atol=1e-4, rtol=1e-4), float(jnp.max(jnp.abs(out3 - ref3)))

    print("KERNEL_OK")
</pallas_src>

<mosaic_0001>
module attributes {stable_mosaic.version = 11 : i64} {
  func.func @_som_dist_kernel(%arg0: i32, %arg1: i32, %arg2: i32, %arg3: memref<8x128xf32, #tpu.memory_space<vmem>>, %arg4: memref<128x128xf32, #tpu.memory_space<vmem>>, %arg5: memref<8x1xf32, #tpu.memory_space<vmem>>, %arg6: memref<1x128xf32, #tpu.memory_space<vmem>>, %arg7: memref<8x128xf32, #tpu.memory_space<vmem>>) attributes {dimension_semantics = [#tpu.dimension_semantics<parallel>, #tpu.dimension_semantics<parallel>, #tpu.dimension_semantics<arbitrary>], iteration_bounds = array<i64: 1, 1, 1>, scalar_prefetch = 0 : i64, scratch_operands = 0 : i64, tpu.core_type = #tpu.core_type<tc>, window_params = [{transform_indices = @transform_0, window_bounds = array<i64: 8, 128>}, {transform_indices = @transform_1, window_bounds = array<i64: 128, 128>}, {transform_indices = @transform_2, window_bounds = array<i64: 8, 1>}, {transform_indices = @transform_3, window_bounds = array<i64: 1, 128>}, {transform_indices = @transform_4, window_bounds = array<i64: 8, 128>}]} {
    %c0_i32 = arith.constant 0 : i32
    %0 = arith.cmpi eq, %arg2, %c0_i32 : i32
    %1 = arith.extui %0 : i1 to i32
    %c0_i32_0 = arith.constant 0 : i32
    %2 = arith.cmpi ne, %1, %c0_i32_0 : i32
    scf.if %2 {
      %cst_10 = arith.constant 0.000000e+00 : f32
      %12 = vector.broadcast %cst_10 : f32 to vector<8x128xf32>
      %c0_11 = arith.constant 0 : index
      %c0_12 = arith.constant 0 : index
      %13 = vector.load %arg7[%c0_11, %c0_12] : memref<8x128xf32, #tpu.memory_space<vmem>>, vector<8x128xf32>
      tpu.vector_store %arg7[%c0_11, %c0_12], %12 {strides = array<i32>} : memref<8x128xf32, #tpu.memory_space<vmem>>, vector<8x128xf32>,
    } else {
    }
    %c0 = arith.constant 0 : index
    %c0_1 = arith.constant 0 : index
    %3 = vector.load %arg3[%c0, %c0_1] : memref<8x128xf32, #tpu.memory_space<vmem>>, vector<8x128xf32>
    %c0_2 = arith.constant 0 : index
    %c0_3 = arith.constant 0 : index
    %4 = vector.load %arg7[%c0_2, %c0_3] : memref<8x128xf32, #tpu.memory_space<vmem>>, vector<8x128xf32>
    %c0_4 = arith.constant 0 : index
    %c0_5 = arith.constant 0 : index
    %5 = vector.load %arg4[%c0_4, %c0_5] : memref<128x128xf32, #tpu.memory_space<vmem>>, vector<128x128xf32>
    %cst = arith.constant dense<0.000000e+00> : vector<8x128xf32>
    %6 = tpu.matmul %3, %5, %cst {dimension_numbers = #tpu.dot_dimension_numbers<[1], [0], [0], [1], [0, 0, 1, 1], [], []>} : vector<8x128xf32>, vector<128x128xf32>, vector<8x128xf32> -> vector<8x128xf32>
    %7 = arith.addf %4, %6 : vector<8x128xf32>
    %c0_6 = arith.constant 0 : index
    %c0_7 = arith.constant 0 : index
    %8 = vector.load %arg7[%c0_6, %c0_7] : memref<8x128xf32, #tpu.memory_space<vmem>>, vector<8x128xf32>
    tpu.vector_store %arg7[%c0_6, %c0_7], %7 {strides = array<i32>} : memref<8x128xf32, #tpu.memory_space<vmem>>, vector<8x128xf32>,
    %c0_i32_8 = arith.constant 0 : i32
    %9 = arith.cmpi eq, %arg2, %c0_i32_8 : i32
    %10 = arith.extui %9 : i1 to i32
    %c0_i32_9 = arith.constant 0 : i32
    %11 = arith.cmpi ne, %10, %c0_i32_9 : i32
    scf.if %11 {
      %c0_10 = arith.constant 0 : index
      %c0_11 = arith.constant 0 : index
      %12 = vector.load %arg5[%c0_10, %c0_11] : memref<8x1xf32, #tpu.memory_space<vmem>>, vector<8x1xf32>
      %c0_12 = arith.constant 0 : index
      %c0_13 = arith.constant 0 : index
      %13 = vector.load %arg6[%c0_12, %c0_13] : memref<1x128xf32, #tpu.memory_space<vmem>>, vector<1x128xf32>
      %14 = vector.broadcast %12 : vector<8x1xf32> to vector<8x128xf32>
      %15 = vector.broadcast %13 : vector<1x128xf32> to vector<8x128xf32>
      %16 = arith.addf %14, %15 : vector<8x128xf32>
      %c0_14 = arith.constant 0 : index
      %c0_15 = arith.constant 0 : index
      %17 = vector.load %arg7[%c0_14, %c0_15] : memref<8x128xf32, #tpu.memory_space<vmem>>, vector<8x128xf32>
      %cst_16 = arith.constant 2.000000e+00 : f32
      %18 = vector.broadcast %cst_16 : f32 to vector<8x128xf32>
      %19 = arith.mulf %18, %17 : vector<8x128xf32>
      %20 = arith.subf %16, %19 : vector<8x128xf32>
      %cst_17 = arith.constant 0.000000e+00 : f32
      %21 = vector.broadcast %cst_17 : f32 to vector<8x128xf32>
      %22 = arith.maximumf %20, %21 : vector<8x128xf32>
      %c0_18 = arith.constant 0 : index
      %c0_19 = arith.constant 0 : index
      %23 = vector.load %arg7[%c0_18, %c0_19] : memref<8x128xf32, #tpu.memory_space<vmem>>, vector<8x128xf32>
      tpu.vector_store %arg7[%c0_18, %c0_19], %22 {strides = array<i32>} : memref<8x128xf32, #tpu.memory_space<vmem>>, vector<8x128xf32>,
    } else {
    }
    return
  }
  func.func @transform_0(%arg0: i32, %arg1: i32, %arg2: i32) -> (i32, i32) {
    %c0_i32 = arith.constant 0 : i32
    return %arg0, %arg2 : i32, i32
  }
  func.func @transform_1(%arg0: i32, %arg1: i32, %arg2: i32) -> (i32, i32) {
    %c0_i32 = arith.constant 0 : i32
    return %arg2, %arg1 : i32, i32
  }
  func.func @transform_2(%arg0: i32, %arg1: i32, %arg2: i32) -> (i32, i32) {
    %c0_i32 = arith.constant 0 : i32
    %c0_i32_0 = arith.constant 0 : i32
    return %arg0, %c0_i32 : i32, i32
  }
  func.func @transform_3(%arg0: i32, %arg1: i32, %arg2: i32) -> (i32, i32) {
    %c0_i32 = arith.constant 0 : i32
    %c0_i32_0 = arith.constant 0 : i32
    return %c0_i32, %arg1 : i32, i32
  }
  func.func @transform_4(%arg0: i32, %arg1: i32, %arg2: i32) -> (i32, i32) {
    %c0_i32 = arith.constant 0 : i32
    return %arg0, %arg1 : i32, i32
  }
}

</mosaic_0001>

<bundles_post_ra>
// kernel: tpu_custom_call.1
= control target key start
LH: loop header
LB: loop body
LE: loop exit
PB: predicated region body
PF: predicated region fallthrough
CT: control target
= control target key end

     0   :  { %9 = vsyncpa [#allocation3], 0  ;;  %s316_s0 = inlined_call_operand.vmem [shape: f32[8,128], index: 0, kind: input, shape index: {}]   ;;  %s317_s1 = inlined_call_operand.hbm [shape: f32[128,128], index: 1, kind: input, shape index: {}]   ;;  %s318_s2 = inlined_call_operand.vmem [shape: f32[8,1], index: 2, kind: input, shape index: {}]   ;;  %s319_s3 = inlined_call_operand.vmem [shape: f32[1,128], index: 3, kind: input, shape index: {}]   ;;  %s320_s4 = inlined_call_operand.hbm [shape: f32[8,128], index: 4, kind: output, shape index: {}]  }
   0x1   :  { %10 = vsyncpa [#allocation4], 0  ;;  %s269_s15 = smov [#allocation2]  }
   0x2   :  { %s18_s16 = sshll.u32 %s269_s15, 4  ;;  %s19_s16 = int_to_ptr.vmem [resolvable:$true] %s18_s16 }
   0x3   :  { %s233_s17 = scalar_lea.vmem %s19_s16, 2048  ;;  %p238_p1 = scmp.lt.s32.totalorder %s19_s16, %s19_s16 }
   0x4   :  { %p234_p0 = scmp.ne.s32.totalorder %s19_s16, %s233_s17  ;;  %p239_p2 = scmp.lt.s32.totalorder %s233_s17, %s233_s17 }
   0x6   :  { %p240_p3 = por %p239_p2, %p238_p1 }
   0x8   :  { %p241_p4 = pnand %p240_p3, %p234_p0 }
   0xa   :  { %244 = shalt.err (!%p241_p4)
}
   0xb   :  { %s270_s18 = smov 128   ;;  %s271_s19 = smov 8  }
   0xc   :  { %24 = dma.hbm_to_vmem [thread:$0]  %s317_s1, 2048, %s19_s16, [#allocation3], %s270_s18, %s270_s18, %s271_s19  }
   0xd   :  { %265 = dma.done.wait [#allocation3], 2048  }
   0xe   :  { %266 = vsyncadd [#allocation3], 4294965248  ;;  %v272_v0 = vmov 0.0   ;;  %vm273_vm0 = vmmov 0   ;;  %v274_v1 = vmov 0   ;;  %v54_v2 = vld [vmem:[#allocation2 + $0x78] sm:$0xff] }
   0xf   :  { %182 = vmatprep.subr.mxu0 %v272_v0  ;;  %214 = vmatprep.mubr.msk.f32.mxu0 %vm273_vm0, %v272_v0  ;;  %v53_v3 = vld [vmem:[#allocation2 + $0x70] sm:$0xff]  ;;  %v52_v4 = vld [vmem:[#allocation2 + $0x68] sm:$0xff]  ;;  %v51_v5 = vld [vmem:[#allocation2 + $0x60] sm:$0xff]  ;;  %s275_s26 = smov [#allocation5]  }
  0x10   :  { %224 = vset.pattern.permute.xlu0 %v274_v1  ;;  %183 = vmatpush3.msra.mxu0 %v54_v2  ;;  %v130_v6 = vld [vmem:[%s318_s2] sm:$0xff]  ;;  %v50_v7 = vld [vmem:[#allocation2 + $0x58] sm:$0xff]  ;;  %v49_v8 = vld [vmem:[#allocation2 + $0x50] sm:$0xff]  ;;  %s155_s27 = sshll.u32 %s275_s26, 4  ;;  %s156_s27 = int_to_ptr.vmem [resolvable:$true] %s155_s27 }
  0x11   :  { %184 = vmatprep.subr.mxu0 %v272_v0  ;;  %134 = vperm.xlu0 %224, %v130_v6   ;;  %v48_v9 = vld [vmem:[#allocation2 + $0x48] sm:$0xff]  ;;  %v47_v10 = vld [vmem:[#allocation2 + $0x40] sm:$0xff]  ;;  %v46_v11 = vld [vmem:[#allocation2 + $0x38] sm:$0xff]  ;;  %s245_s28 = scalar_lea.vmem %s156_s27, 128  ;;  %p250_p6 = scmp.lt.s32.totalorder %s156_s27, %s156_s27 }
  0x12   :  { %185 = vmatpush3.msra.mxu0 %v53_v3  ;;  %v45_v12 = vld [vmem:[#allocation2 + $0x30] sm:$0xff]  ;;  %v44_v13 = vld [vmem:[#allocation2 + $0x28] sm:$0xff]  ;;  %v43_v14 = vld [vmem:[#allocation2 + $0x20] sm:$0xff]  ;;  %p246_p5 = scmp.ne.s32.totalorder %s156_s27, %s245_s28  ;;  %p251_p7 = scmp.lt.s32.totalorder %s245_s28, %s245_s28 }
  0x13   :  { %186 = vmatprep.subr.mxu0 %v272_v0  ;;  %v42_v15 = vld [vmem:[#allocation2 + $0x18] sm:$0xff]  ;;  %v41_v16 = vld [vmem:[#allocation2 + $0x10] sm:$0xff]  ;;  %v40_v17 = vld [vmem:[#allocation2 + $0x8] sm:$0xff] }
  0x14   :  { %187 = vmatpush3.msra.mxu0 %v52_v4  ;;  %v39_v18 = vld [vmem:[#allocation2] sm:$0xff]  ;;  %p252_p8 = por %p251_p7, %p250_p6 }
  0x15   :  { %188 = vmatprep.subr.mxu0 %v272_v0  ;;  %v37_v19 = vld [vmem:[%s316_s0] sm:$0xff] }
  0x16   :  { %189 = vmatpush3.msra.mxu0 %v51_v5  ;;  %v164_v20 = vld [vmem:[%s319_s3] ss:$0 sm:$0xff]  ;;  %p253_p9 = pnand %p252_p8, %p246_p5 }
  0x17   :  { %190 = vmatprep.subr.mxu0 %v272_v0 }
  0x18   :  { %191 = vmatpush3.msra.mxu0 %v50_v7 }
  0x19   :  { %192 = vmatprep.subr.mxu0 %v272_v0 }
  0x1a   :  { %193 = vmatpush3.msra.mxu0 %v49_v8 }
  0x1b   :  { %194 = vmatprep.subr.mxu0 %v272_v0 }
  0x1c   :  { %195 = vmatpush3.msra.mxu0 %v48_v9 }
  0x1d   :  { %196 = vmatprep.subr.mxu0 %v272_v0 }
  0x1e   :  { %197 = vmatpush3.msra.mxu0 %v47_v10 }
  0x1f   :  { %198 = vmatprep.subr.mxu0 %v272_v0 }
  0x20   :  { %199 = vmatpush3.msra.mxu0 %v46_v11 }
  0x21   :  { %200 = vmatprep.subr.mxu0 %v272_v0 }
  0x22   :  { %201 = vmatpush3.msra.mxu0 %v45_v12 }
  0x23   :  { %202 = vmatprep.subr.mxu0 %v272_v0 }
  0x24   :  { %203 = vmatpush3.msra.mxu0 %v44_v13 }
  0x25   :  { %204 = vmatprep.subr.mxu0 %v272_v0 }
  0x26   :  { %205 = vmatpush3.msra.mxu0 %v43_v14 }
  0x27   :  { %206 = vmatprep.subr.mxu0 %v272_v0 }
  0x28   :  { %207 = vmatpush3.msra.mxu0 %v42_v15 }
  0x29   :  { %208 = vmatprep.subr.mxu0 %v272_v0 }
  0x2a   :  { %209 = vmatpush3.msra.mxu0 %v41_v16 }
  0x2b   :  { %210 = vmatprep.subr.mxu0 %v272_v0 }
  0x2c   :  { %211 = vmatpush3.msra.mxu0 %v40_v17 }
  0x2d   :  { %212 = vmatprep.subr.mxu0 %v272_v0 }
  0x2e   :  { %213 = vmatpush3.msra.mxu0 %v39_v18 }
  0x2f   :  { %215 = vmatmul.mubr.f32.vlgmr.msra.gmra.mxu0 %v37_v19 }
  0x8c   :  { %v135_v21 = vpop.permute.xlu0 %134 }
  0x8d   :  { %v143_v23 = vadd.f32 %v164_v20, %v135_v21 }
  0xef   :  { %v121_v22 = vpop.f32.mrf.mxu0 }
  0xf0   :  { %v145_v25 = vmul.f32 2.0, %v121_v22 }
  0xf1   :  { %v216_v24 = vpop.f32.mrf.mxu0 }
  0xf2   :  { %v146_v26 = vsub.f32 %v143_v23, %v145_v25 }
  0xf4   :  { %v147_v27 = vmax.f32 %v146_v26, 0.0 }
  0xf6   :  { %148 = vst [vmem:[#allocation5] sm:$0xff] %v147_v27 }
  0xf7   :  { %256 = shalt.err (!%p253_p9)
}
  0xf8   :  { %158 = dma.vmem_to_hbm [thread:$0]  %s156_s27, 128, %s320_s4, [#allocation4]  }
  0xf9   :  { %267 = dma.done.wait [#allocation4], 128  }
  0xfa   :  { %268 = vsyncadd [#allocation4], 4294967168 }
  0xfb   :  { %162 = vsyncpa [#allocation3], 1 }
  0xfc   :  { %163 = vsyncpa [#allocation4], 1 }

</bundles_post_ra>
